<compile_context>
chip_gen: v6e
topology: v6e:2x2x1
jax: 0.10.0
libtpu: 0.0.40
codegen_flags: <defaults>
</compile_context>

<pallas_src>
import functools

import jax
import jax.numpy as jnp
from jax import lax
from jax.experimental import pallas as pl
from jax.experimental.pallas import tpu as pltpu


def _round_up(x, m):
    return (x + m - 1) // m * m


def _conv_stats_kernel(x_ref, w_ref, b_ref, y_ref, s_ref, *, t_tile, t_out):
    """One (batch, T-tile) grid step: fused conv matmul + bias + partial stats.

    x_ref: [K*C_in, t_tile]  im2col'd input tile (MXU dtype)
    w_ref: [C_out, K*C_in]   tap-fused weight     (MXU dtype)
    b_ref: [C_out, 1]        f32 bias
    y_ref: [C_out, t_tile]   conv+bias output tile (f32)
    s_ref: [2, 128]          row0 = sum, row1 = sum of squares (valid cols only)
    """
    t = pl.program_id(1)

    # Single MXU dot, contraction = K*C_in (the per-tap loop is fused away).
    acc = jnp.dot(w_ref[...], x_ref[...], preferred_element_type=jnp.float32)
    acc = acc + b_ref[...].astype(jnp.float32)
    y_ref[...] = acc.astype(y_ref.dtype)

    # One-pass GlobLN partial statistics in f32, masking padded tail lanes.
    col = lax.broadcasted_iota(jnp.int32, (1, t_tile), 1) + t * t_tile
    valid = (col < t_out).astype(jnp.float32)          # [1, t_tile]
    am = acc * valid
    s_sum = jnp.sum(am)
    s_sq = jnp.sum(am * am)
    ones = jnp.ones((1, 128), jnp.float32)
    s_ref[...] = jnp.concatenate([s_sum * ones, s_sq * ones], axis=0)


def _norm_kernel(y_ref, sc_ref, sh_ref, o_ref):
    """Finalize: out = scale*y + shift (gamma, beta, mean, rstd pre-folded)."""
    o_ref[...] = (y_ref[...] * sc_ref[...] + sh_ref[...]).astype(o_ref.dtype)


def conv_norm_forward(x, weight, bias, gamma, beta, *, kSize, stride=1, groups=1,
                      mxu_dtype=jnp.bfloat16):
    """x: [B, C_in, T]; weight: [C_out, C_in, K]; bias/gamma/beta: [C_out]."""
    assert stride == 1 and groups == 1, "kernel implements the default stride=1, groups=1"
    # TODO(synk): stride>1 / grouped conv not implemented in the Pallas kernels.

    B, C_in, T = x.shape
    C_out, _, K = weight.shape
    assert K == kSize

    pad = (kSize - 1) // 2
    T_out = T + 2 * pad - (K - 1)
    t_tile = min(512, _round_up(T_out, 128))       # lane-dense tiles (mult. of 128)
    T_out_p = _round_up(T_out, t_tile)
    n_t = T_out_p // t_tile
    KC = K * C_in

    # ---- glue: padding, im2col unfold, tap-fused weight, parameter reshapes ----
    x_pad = jnp.pad(x, ((0, 0), (0, 0), (pad, pad + (T_out_p - T_out))))
    x_unf = jnp.concatenate(
        [x_pad[:, :, k:k + T_out_p] for k in range(K)], axis=1
    ).astype(mxu_dtype)                                         # [B, K*C_in, T_out_p]
    w2 = jnp.transpose(weight, (0, 2, 1)).reshape(C_out, KC).astype(mxu_dtype)
    b2 = bias.reshape(C_out, 1).astype(jnp.float32)

    # ---- pass 1: conv + bias + per-tile partial stats ----
    conv_kernel = functools.partial(_conv_stats_kernel, t_tile=t_tile, t_out=T_out)
    y, stats = pl.pallas_call(
        conv_kernel,
        out_shape=(
            jax.ShapeDtypeStruct((B, C_out, T_out_p), jnp.float32),
            jax.ShapeDtypeStruct((B, n_t, 2, 128), jnp.float32),
        ),
        grid=(B, n_t),
        in_specs=(
            pl.BlockSpec((pl.Squeezed(), KC, t_tile), lambda b, t: (b, 0, t)),
            # grid-invariant operands: constant index_map -> fetched once, kept resident
            pl.BlockSpec((C_out, KC), lambda b, t: (0, 0)),
            pl.BlockSpec((C_out, 1), lambda b, t: (0, 0)),
        ),
        out_specs=(
            pl.BlockSpec((pl.Squeezed(), C_out, t_tile), lambda b, t: (b, 0, t)),
            pl.BlockSpec((pl.Squeezed(), pl.Squeezed(), 2, 128),
                         lambda b, t: (b, t, 0, 0)),
        ),
        compiler_params=pltpu.CompilerParams(
            dimension_semantics=("parallel", "parallel"),
            vmem_limit_bytes=32 * 1024 * 1024,
        ),
    )(x_unf, w2, b2)

    # ---- tiny scalar glue: fold mean/var/gamma/beta into per-(b,c) scale & shift ----
    n_elem = float(C_out * T_out)
    ssum = jnp.sum(stats[:, :, 0, 0], axis=1)                   # [B]
    ssq = jnp.sum(stats[:, :, 1, 0], axis=1)                    # [B]
    mean = ssum / n_elem
    var = jnp.maximum(ssq / n_elem - mean * mean, 0.0)          # f32, clamped
    rstd = lax.rsqrt(var + 1e-8)
    scale = gamma[None, :].astype(jnp.float32) * rstd[:, None]  # [B, C_out]
    shift = beta[None, :].astype(jnp.float32) - scale * mean[:, None]
    scale3 = scale[:, :, None]
    shift3 = shift[:, :, None]

    # ---- pass 2: lane-dense fused multiply-add finalize ----
    out = pl.pallas_call(
        _norm_kernel,
        out_shape=jax.ShapeDtypeStruct((B, C_out, T_out_p), x.dtype),
        grid=(B, n_t),
        in_specs=(
            pl.BlockSpec((pl.Squeezed(), C_out, t_tile), lambda b, t: (b, 0, t)),
            pl.BlockSpec((pl.Squeezed(), C_out, 1), lambda b, t: (b, 0, 0)),
            pl.BlockSpec((pl.Squeezed(), C_out, 1), lambda b, t: (b, 0, 0)),
        ),
        out_specs=pl.BlockSpec((pl.Squeezed(), C_out, t_tile), lambda b, t: (b, 0, t)),
        compiler_params=pltpu.CompilerParams(
            dimension_semantics=("parallel", "parallel"),
            vmem_limit_bytes=32 * 1024 * 1024,
        ),
    )(y, scale3, shift3)

    return out[:, :, :T_out]


def conv_norm_reference(x, weight, bias, gamma, beta, *, kSize):
    """Pure-JAX reference matching the PyTorch ConvNorm forward."""
    pad = (kSize - 1) // 2
    y = lax.conv_general_dilated(
        x, weight,
        window_strides=(1,),
        padding=[(pad, pad)],
        dimension_numbers=("NCH", "OIH", "NCH"),
    ) + bias[None, :, None]
    mean = jnp.mean(y, axis=(1, 2), keepdims=True)
    var = jnp.mean((y - mean) ** 2, axis=(1, 2), keepdims=True)
    normed = (y - mean) / jnp.sqrt(var + 1e-8)
    return gamma[None, :, None] * normed + beta[None, :, None]


if __name__ == "__main__":
    # Small shapes consistent with ConvNorm(nIn=4, nOut=8, kSize=3)
    B, nIn, nOut, kSize, T = 2, 4, 8, 3, 16

    key = jax.random.PRNGKey(0)
    kx, kw, kb, kg, kbe = jax.random.split(key, 5)

    x = jax.random.normal(kx, (B, nIn, T), dtype=jnp.float32)

    # Deterministic parameter init (synthetic; mirrors shapes of nn.Conv1d + GlobLN)
    fan_in = nIn * kSize
    bound = 1.0 / (fan_in ** 0.5)
    weight = jax.random.uniform(kw, (nOut, nIn, kSize), jnp.float32, -bound, bound)
    bias = jax.random.uniform(kb, (nOut,), jnp.float32, -bound, bound)
    gamma = 1.0 + 0.1 * jax.random.normal(kg, (nOut,), jnp.float32)
    beta = 0.1 * jax.random.normal(kbe, (nOut,), jnp.float32)

    ref = conv_norm_reference(x, weight, bias, gamma, beta, kSize=kSize)

    # Exact (f32 MXU operand) path — tight tolerance.
    out_f32 = conv_norm_forward(x, weight, bias, gamma, beta, kSize=kSize,
                                mxu_dtype=jnp.float32)
    out_f32 = jax.block_until_ready(out_f32)
    assert out_f32.shape == (B, nOut, T)
    assert jnp.allclose(out_f32, ref, atol=1e-4, rtol=1e-4), "f32 path mismatch vs reference"

    # Default fast path (bf16 MXU operands, f32 accumulate/norm) — loose tolerance.
    out_bf16 = conv_norm_forward(x, weight, bias, gamma, beta, kSize=kSize,
                                 mxu_dtype=jnp.bfloat16)
    out_bf16 = jax.block_until_ready(out_bf16)
    assert out_bf16.shape == (B, nOut, T)
    assert jnp.allclose(out_bf16, ref, atol=5e-2, rtol=5e-2), "bf16 path mismatch vs reference"

    print("KERNEL_OK")
</pallas_src>

<mosaic_0001>
module attributes {stable_mosaic.version = 11 : i64} {
  func.func @_conv_stats_kernel(%arg0: i32, %arg1: i32, %arg2: memref<1x12x128xf32, #tpu.memory_space<vmem>>, %arg3: memref<8x12xf32, #tpu.memory_space<vmem>>, %arg4: memref<8x1xf32, #tpu.memory_space<vmem>>, %arg5: memref<1x8x128xf32, #tpu.memory_space<vmem>>, %arg6: memref<1x1x2x128xf32, #tpu.memory_space<vmem>>) attributes {dimension_semantics = [#tpu.dimension_semantics<parallel>, #tpu.dimension_semantics<parallel>], iteration_bounds = array<i64: 2, 1>, scalar_prefetch = 0 : i64, scratch_operands = 0 : i64, tpu.core_type = #tpu.core_type<tc>, window_params = [{transform_indices = @transform_0, window_bounds = array<i64: 1, 12, 128>}, {pipeline_mode = #tpu.pipeline_mode<synchronous>, transform_indices = @transform_1, window_bounds = array<i64: 8, 12>}, {pipeline_mode = #tpu.pipeline_mode<synchronous>, transform_indices = @transform_2, window_bounds = array<i64: 8, 1>}, {transform_indices = @transform_3, window_bounds = array<i64: 1, 8, 128>}, {transform_indices = @transform_4, window_bounds = array<i64: 1, 1, 2, 128>}]} {
    %c0 = arith.constant 0 : index
    %c0_0 = arith.constant 0 : index
    %0 = vector.load %arg3[%c0, %c0_0] : memref<8x12xf32, #tpu.memory_space<vmem>>, vector<8x12xf32>
    %c0_1 = arith.constant 0 : index
    %c0_2 = arith.constant 0 : index
    %c0_3 = arith.constant 0 : index
    %1 = vector.load %arg2[%c0_1, %c0_2, %c0_3] : memref<1x12x128xf32, #tpu.memory_space<vmem>>, vector<1x12x128xf32>
    %2 = vector.shape_cast %1 : vector<1x12x128xf32> to vector<12x128xf32>
    %cst = arith.constant dense<0.000000e+00> : vector<8x128xf32>
    %3 = tpu.matmul %0, %2, %cst {dimension_numbers = #tpu.dot_dimension_numbers<[1], [0], [0], [1], [0, 0, 1, 1], [], []>} : vector<8x12xf32>, vector<12x128xf32>, vector<8x128xf32> -> vector<8x128xf32>
    %c0_4 = arith.constant 0 : index
    %c0_5 = arith.constant 0 : index
    %4 = vector.load %arg4[%c0_4, %c0_5] : memref<8x1xf32, #tpu.memory_space<vmem>>, vector<8x1xf32>
    %5 = vector.broadcast %4 : vector<8x1xf32> to vector<8x128xf32>
    %6 = arith.addf %3, %5 : vector<8x128xf32>
    %c0_6 = arith.constant 0 : index
    %c0_7 = arith.constant 0 : index
    %c0_8 = arith.constant 0 : index
    %7 = vector.load %arg5[%c0_6, %c0_7, %c0_8] : memref<1x8x128xf32, #tpu.memory_space<vmem>>, vector<1x8x128xf32>
    %8 = vector.shape_cast %7 : vector<1x8x128xf32> to vector<8x128xf32>
    %9 = vector.shape_cast %6 : vector<8x128xf32> to vector<1x8x128xf32>
    tpu.vector_store %arg5[%c0_6, %c0_7, %c0_8], %9 {strides = array<i32>} : memref<1x8x128xf32, #tpu.memory_space<vmem>>, vector<1x8x128xf32>,
    %10 = tpu.iota {dimensions = array<i32: 1>} : vector<1x128xi32>
    %c128_i32 = arith.constant 128 : i32
    %11 = arith.muli %arg1, %c128_i32 : i32
    %12 = vector.broadcast %11 : i32 to vector<1x128xi32>
    %13 = arith.addi %10, %12 : vector<1x128xi32>
    %c16_i32 = arith.constant 16 : i32
    %14 = vector.broadcast %c16_i32 : i32 to vector<1x128xi32>
    %15 = arith.cmpi slt, %13, %14 : vector<1x128xi32>
    %16 = arith.extui %15 : vector<1x128xi1> to vector<1x128xi32>
    %17 = arith.sitofp %16 : vector<1x128xi32> to vector<1x128xf32>
    %18 = vector.broadcast %17 : vector<1x128xf32> to vector<8x128xf32>
    %19 = arith.mulf %6, %18 : vector<8x128xf32>
    %20 = vector.shape_cast %19 : vector<8x128xf32> to vector<1x8x128xf32>
    %cst_9 = arith.constant dense<0.000000e+00> : vector<1xf32>
    %21 = vector.multi_reduction <add>, %20, %cst_9 [1, 2] : vector<1x8x128xf32> to vector<1xf32>
    %22 = vector.shape_cast %21 : vector<1xf32> to vector<1x1x1xf32>
    %23 = vector.extract %22[0, 0, 0] : f32 from vector<1x1x1xf32>
    %24 = arith.mulf %19, %19 : vector<8x128xf32>
    %25 = vector.shape_cast %24 : vector<8x128xf32> to vector<1x8x128xf32>
    %cst_10 = arith.constant dense<0.000000e+00> : vector<1xf32>
    %26 = vector.multi_reduction <add>, %25, %cst_10 [1, 2] : vector<1x8x128xf32> to vector<1xf32>
    %27 = vector.shape_cast %26 : vector<1xf32> to vector<1x1x1xf32>
    %28 = vector.extract %27[0, 0, 0] : f32 from vector<1x1x1xf32>
    %cst_11 = arith.constant 1.000000e+00 : f32
    %29 = vector.broadcast %cst_11 : f32 to vector<1x128xf32>
    %30 = vector.broadcast %23 : f32 to vector<1x128xf32>
    %31 = arith.mulf %30, %29 : vector<1x128xf32>
    %32 = vector.broadcast %28 : f32 to vector<1x128xf32>
    %33 = arith.mulf %32, %29 : vector<1x128xf32>
    %34 = tpu.concatenate %31, %33 in 0 : vector<1x128xf32>, vector<1x128xf32> -> vector<2x128xf32>
    %c0_12 = arith.constant 0 : index
    %c0_13 = arith.constant 0 : index
    %c0_14 = arith.constant 0 : index
    %c0_15 = arith.constant 0 : index
    %35 = vector.load %arg6[%c0_12, %c0_13, %c0_14, %c0_15] : memref<1x1x2x128xf32, #tpu.memory_space<vmem>>, vector<1x1x2x128xf32>
    %36 = vector.shape_cast %35 : vector<1x1x2x128xf32> to vector<2x128xf32>
    %37 = vector.shape_cast %34 : vector<2x128xf32> to vector<1x1x2x128xf32>
    tpu.vector_store %arg6[%c0_12, %c0_13, %c0_14, %c0_15], %37 {strides = array<i32>} : memref<1x1x2x128xf32, #tpu.memory_space<vmem>>, vector<1x1x2x128xf32>,
    return
  }
  func.func @transform_0(%arg0: i32, %arg1: i32) -> (i32, i32, i32) {
    %c0_i32 = arith.constant 0 : i32
    %c0_i32_0 = arith.constant 0 : i32
    return %arg0, %c0_i32, %arg1 : i32, i32, i32
  }
  func.func @transform_1(%arg0: i32, %arg1: i32) -> (i32, i32) {
    %c0_i32 = arith.constant 0 : i32
    %c0_i32_0 = arith.constant 0 : i32
    %c0_i32_1 = arith.constant 0 : i32
    return %c0_i32, %c0_i32_0 : i32, i32
  }
  func.func @transform_2(%arg0: i32, %arg1: i32) -> (i32, i32) {
    %c0_i32 = arith.constant 0 : i32
    %c0_i32_0 = arith.constant 0 : i32
    %c0_i32_1 = arith.constant 0 : i32
    return %c0_i32, %c0_i32_0 : i32, i32
  }
  func.func @transform_3(%arg0: i32, %arg1: i32) -> (i32, i32, i32) {
    %c0_i32 = arith.constant 0 : i32
    %c0_i32_0 = arith.constant 0 : i32
    return %arg0, %c0_i32, %arg1 : i32, i32, i32
  }
  func.func @transform_4(%arg0: i32, %arg1: i32) -> (i32, i32, i32, i32) {
    %c0_i32 = arith.constant 0 : i32
    %c0_i32_0 = arith.constant 0 : i32
    %c0_i32_1 = arith.constant 0 : i32
    return %arg0, %arg1, %c0_i32, %c0_i32_0 : i32, i32, i32, i32
  }
}

</mosaic_0001>

<bundles_post_ra>
// kernel: tpu_custom_call.1
= control target key start
LH: loop header
LB: loop body
LE: loop exit
PB: predicated region body
PF: predicated region fallthrough
CT: control target
= control target key end

     0   :  { %10 = vsyncpa [#allocation3], 0  ;;  %s864_s0 = inlined_call_operand.vmem [shape: f32[2,12,128], index: 0, kind: input, shape index: {}]   ;;  %s865_s1 = inlined_call_operand.vmem [shape: f32[8,12], index: 1, kind: input, shape index: {}]   ;;  %s866_s2 = inlined_call_operand.vmem [shape: f32[8,1], index: 2, kind: input, shape index: {}]   ;;  %s867_s3 = inlined_call_operand.hbm [shape: f32[2,8,128], index: 3, kind: output, shape index: {0}]   ;;  %s868_s4 = inlined_call_operand.hbm [shape: f32[2,1,2,128], index: 4, kind: output, shape index: {1}]  }
   0x1   :  { %12 = vsyncpa [#allocation3 + $0x1], 0 }
   0x2   :  { %13 = vsyncpa [#allocation5], 0 }
   0x3   :  { %15 = vsyncpa [#allocation5 + $0x1], 0  ;;  %s731_s15 = smov 0   ;;  %s733_s16 = smov 0  }
   0x4   :  { %s735_s17 = smov 0   ;;  %s737_s18 = smov 0  }
   0x5   :  { %s739_s19 = smov 0   ;;  %s741_s20 = smov 0  }
   0x6 LB: > { %s496_s21 = sadd.s32 4294967295, %s699_s20   ;;  %s497_s22 = sadd.s32 4294967294, %s699_s20   ;;  %s699_s20 = sphi %s741_s20, %s21_s20   ;;  %s695_s19 = sphi %s739_s19, %s875_s19   ;;  %s691_s18 = sphi %s737_s18, %s874_s18   ;;  %s687_s17 = sphi %s735_s17, %s873_s17   ;;  %s683_s16 = sphi %s733_s16, %s872_s16   ;;  %s679_s15 = sphi %s731_s15, %s871_s15  }
   0x7   : > { %s33_s23 = sadd.s32 1, %s695_s19  ;;  %s112_s24 = sadd.s32 1, %s687_s17 }
   0x8   : > { %p35_p0 = scmp.ge.s32.totalorder %s33_s23, 2  ;;  %p122_p1 = scmp.ne.s32.totalorder %s687_s17, %s683_s16 }
   0x9   : > { %p123_p2 = scmp.eq.s32.totalorder %s496_s21, 1  ;;  %p128_p3 = scmp.ne.s32.totalorder %s683_s16, %s679_s15 }
   0xa   : > { %s877_s23 = smov (%p35_p0, %s33_s23), 0  ;;  %p129_p5 = scmp.eq.s32.totalorder %s497_s22, 1 }
   0xb   : > { %p771_p4 = por %p123_p2, %p122_p1  ;;  %s107_s26 = ssub.s32 %s695_s19, %s877_s23 }
   0xc   : > { %p500_p6 = scmp.ge.s32.totalorder %s699_s20, 1  ;;  %p110_p7 = scmp.eq.s32.totalorder %s107_s26, 0 }
   0xd   : > { %p778_p8 = por %p129_p5, %p128_p3  ;;  %p192_p9 = scmp.lt.s32.totalorder %s699_s20, 3 }
   0xe   : > { %s784_s28 = scalar_select %p110_p7, %s687_s17, %s112_s24  }
   0xf   : > { %p193_p10 = pnand %p500_p6, %p192_p9 }
  0x10   : > { %p226_p11 = scmp.lt.s32.totalorder (!%p193_p10), %s691_s18, 1  ;;  %s798_s12 = sand.u32 (!%p193_p10), 1, %s683_s16  }
  0x11   : > { %196 = sbr.rel (%p193_p10) target bundleno = 444 (0x1bc), region = 32  ;;  %s501_s13 = sshll.u32 (!%p193_p10), %s798_s12, 3 }
  0x12   : > { %s218_s14 = scalar_lea.vmem (!%p193_p10), [#allocation2], %s501_s13  ;;  %s510_s21 = sshll.u32 (!%p193_p10), %s691_s18, 7 }
  0x13   : > { %s375_s22 = sshll.u32 (!%p193_p10), %s218_s14, 4  ;;  %s373_s29 = scalar_lea.hbm (!%p193_p10), %s867_s3, %s510_s21  ;;  %s376_s22 = int_to_ptr.vmem [resolvable:$true] %s375_s22 }
  0x14   : > { %s356_s30 = scalar_lea.sflag (!%p193_p10), [#allocation3], %s798_s12 }
  0x16   : > { %v701_v0 = vmov 0.0   ;;  %vm702_vm0 = vmmov 0   ;;  %v237_v1 = vld [vmem:[%s866_s2] sm:$0xff]  ;;  %s227_s5 = scalar_select %p226_p11, %s691_s18, 1  ;;  %v703_v2 = vmov 0   ;;  %vm247_vm1 = vcmask 1043456  }
  0x17   : > { %518 = vmatprep.subr.mxu0 %v701_v0  ;;  %522 = vmatprep.mubr.msk.f32.mxu0 %vm702_vm0, %v701_v0  ;;  %v234_v5 = vld [vmem:[%s865_s1] sm:$0xff]  ;;  %vm243_vm2 = vcmask 97280   ;;  %v322_v6 = vlaneseq }
  0x18   : > { %592 = vset.pattern.permute.xlu0 %v703_v2  ;;  %s514_s6 = sshll.u32 %s227_s5, 4  ;;  %s593_s5 = scalar_lea.vmem %s376_s22, 128 }
  0x19   : > { %240 = vperm.xlu0 %592, %v237_v1   ;;  %s233_s9 = scalar_lea.vmem %s864_s0, %s514_s6  ;;  %v323_v7 = vand.u32 127, %v322_v6  ;;  %p594_p12 = scmp.ne.s32.totalorder %s376_s22, %s593_s5 }
  0x1a   : > { %v236_v3 = vld [vmem:[%s233_s9 + $0x8] sm:$0xf]  ;;  %v235_v4 = vld [vmem:[%s233_s9] sm:$0xff]  ;;  %s704_s6 = smov [#allocation2]  }
  0x1b   : > { %519 = vmatpush3.msk.msra.mxu0 %vm247_vm1, %v236_v3  ;;  %vm327_vm3 = vcmp.lt.s32.totalorder %v323_v7, 16  ;;  %p595_p13 = pnand %p594_p12, %p771_p4  ;;  %s597_s7 = sshll.u32 %s704_s6, 4  ;;  %s598_s7 = int_to_ptr.vmem [resolvable:$false] %s597_s7 }
  0x1c   : > { %520 = vmatprep.subr.mxu0 %v701_v0  ;;  %v507_v10 = vsel %vm327_vm3, 1.0, %v701_v0  ;;  %s599_s8 = scalar_lea.vmem %s598_s7, 256  ;;  %p600_p1 = scmp.lt.s32.totalorder %s376_s22, %s598_s7 }
  0x1d   : > { %521 = vmatpush3.msra.mxu0 %v235_v4  ;;  %p596_p0 = pneg %p595_p13  ;;  %p601_p2 = scmp.lt.s32.totalorder %s599_s8, %s593_s5 }
  0x1e   : > { %523 = vmatmul.mubr.msk.f32.vlgmr.msra.gmra.mxu0 %vm243_vm2, %v234_v5 }
  0x1f   : > { %p602_p3 = por %p601_p2, %p600_p1 }
  0x21   : > { %p603_p5 = pnand %p602_p3, %p596_p0 }
  0x94   : > { %v241_v8 = vpop.permute.xlu0 %240 }
  0xde   : > { %v317_v9 = vpop.f32.mrf.mxu0 }
  0xdf   : > { %v318_v11 = vadd.f32 %v317_v9, %v241_v8 }
  0xe0   : > { %v524_v12 = vpop.f32.mrf.mxu0 }
  0xe1   : > { %321 = vst [vmem:[%s218_s14] sm:$0xff] %v318_v11  ;;  %v330_v13 = vmul.f32 %v507_v10, %v318_v11 }
  0xe3   : > { %331 = vadd.xlane.f32.xlu0 %v330_v13  ;;  %v340_v14 = vmul.f32 %v330_v13, %v330_v13 }
  0xe5   : > { %341 = vadd.xlane.f32.xlu1 %v340_v14 }
  0xe6   : > { %606 = shalt.err (!%p603_p5)
}
  0xe7   : > { %s607_s9 = scalar_lea.hbm %s373_s29, 128  ;;  %s611_s13 = scalar_lea.hbm %s867_s3, 256 }
  0xe8   : > { %p608_p6 = scmp.ne.s32.totalorder %s373_s29, %s607_s9  ;;  %p612_p10 = scmp.lt.s32.totalorder %s373_s29, %s867_s3 }
  0xe9   : > { %p613_p11 = scmp.lt.s32.totalorder %s611_s13, %s607_s9 }
  0xea   : > { %p609_p7 = pnand %p608_p6, %p771_p4 }
  0xeb   : > { %p614_p12 = por %p613_p11, %p612_p10 }
  0xec   : > { %p610_p9 = pneg %p609_p7 }
  0xee   : > { %p615_p13 = pnand %p614_p12, %p610_p9 }
  0xf0   : > { %618 = shalt.err (!%p615_p13)
}
  0xf1   : > { %529 = dma.vmem_to_hbm [thread:$0]  (%p771_p4), %s376_s22, 128, %s373_s29, %s356_s30   ;;  %vm352_vm4 = vcmask 1040384  }
  0xf2   : > { %s502_s22 = sshll.u32 %s798_s12, 1  ;;  %s511_s24 = sshll.u32 %s691_s18, 5 }
  0xf3   : > { %s225_s29 = scalar_lea.vmem [#allocation4], %s502_s22  ;;  %s823_s8 = scalar_lea.hbm %s868_s4, %s511_s24 }
  0xf4   : > { %s389_s30 = sshll.u32 %s225_s29, 4  ;;  %s361_s9 = scalar_lea.sflag [#allocation5], %s798_s12  ;;  %s390_s30 = int_to_ptr.vmem [resolvable:$true] %s389_s30 }
  0xf5   : > { %s619_s10 = scalar_lea.vmem %s390_s30, 32  ;;  %s705_s18 = smov [#allocation4]  }
  0xf6   : > { %p620_p0 = scmp.ne.s32.totalorder %s390_s30, %s619_s10  ;;  %s623_s11 = sshll.u32 %s705_s18, 4  ;;  %s624_s11 = int_to_ptr.vmem [resolvable:$false] %s623_s11 }
  0xf7   : > { %s625_s13 = scalar_lea.vmem %s624_s11, 64  ;;  %p626_p3 = scmp.lt.s32.totalorder %s390_s30, %s624_s11 }
  0xf8   : > { %p621_p1 = pnand %p620_p0, %p771_p4  ;;  %p627_p5 = scmp.lt.s32.totalorder %s625_s13, %s619_s10 }
  0xfa   : > { %p622_p2 = pneg %p621_p1  ;;  %p628_p6 = por %p627_p5, %p626_p3 }
  0xfc   : > { %p629_p7 = pnand %p628_p6, %p622_p2 }
 0x16c   : > { %v332_v15 = vpop.xlane.xlu0 %331 }
 0x16d   : > { %v333_v16 = vrot.slane %v332_v15, 4 }
 0x16e   : > { %v342_v17 = vpop.xlane.xlu1 %341 }
 0x16f   : > { %v334_v18 = vadd.f32 %v333_v16, %v332_v15  ;;  %v343_v19 = vrot.slane %v342_v17, 4 }
 0x171   : > { %v335_v20 = vrot.slane %v334_v18, 2  ;;  %v344_v21 = vadd.f32 %v343_v19, %v342_v17 }
 0x173   : > { %v345_v22 = vrot.slane %v344_v21, 2  ;;  %v336_v23 = vadd.f32 %v335_v20, %v334_v18 }
 0x175   : > { %v346_v24 = vadd.f32 %v345_v22, %v344_v21  ;;  %v337_v25 = vrot.slane %v336_v23, 1 }
 0x177   : > { %v338_v26 = vadd.f32 %v337_v25, %v336_v23  ;;  %v347_v27 = vrot.slane %v346_v24, 1 }
 0x179   : > { %525 = vpush %v338_v26  ;;  %v348_v28 = vadd.f32 %v347_v27, %v346_v24 }
 0x17b   : > { %527 = vpush %v348_v28 }
 0x1aa   : > { %s526_s26 = spop %525 }
 0x1ab   : > { %v350_v29 = vstv %s526_s26 }
 0x1ac   : > { %s528_s5 = spop %527 }
 0x1ad   : > { %v351_v30 = vstv %s528_s5 }
 0x1ae   : > { %v353_v31 = vsel %vm352_vm4, %v350_v29, %v351_v30 }
 0x1af   : > { %354 = vst [vmem:[%s225_s29] sm:$0x3] %v353_v31 }
 0x1b0   : > { %632 = shalt.err (!%p629_p7)
}
 0x1b1   : > { %s633_s14 = scalar_lea.hbm %s823_s8, 32  ;;  %s637_s22 = scalar_lea.hbm %s868_s4, 64 }
 0x1b2   : > { %p634_p9 = scmp.ne.s32.totalorder %s823_s8, %s633_s14  ;;  %p638_p12 = scmp.lt.s32.totalorder %s823_s8, %s868_s4 }
 0x1b3   : > { %p639_p13 = scmp.lt.s32.totalorder %s637_s22, %s633_s14 }
 0x1b4   : > { %p635_p10 = pnand %p634_p9, %p771_p4 }
 0x1b5   : > { %p640_p0 = por %p639_p13, %p638_p12 }
 0x1b6   : > { %p636_p11 = pneg %p635_p10 }
 0x1b8   : > { %p641_p1 = pnand %p640_p0, %p636_p11 }
 0x1ba   : > { %644 = shalt.err (!%p641_p1)
}
 0x1bb   : > { %530 = dma.vmem_to_hbm [thread:$0]  (%p771_p4), %s390_s30, 32, %s823_s8, %s361_s9  }
 0x1bc PF: > { %p540_p2 = scmp.ge.s32.totalorder %s699_s20, 2  ;;  %s401_s29 = sand.u32 1, %s679_s15  }
 0x1bd   : > { %s402_s5 = scalar_lea.sflag [#allocation3], %s401_s29 }
 0x1be   : > { %p534_p3 = pnand %p540_p2, %p778_p8 }
 0x1c0   : > { %p535_p5 = pneg %p534_p3 }
 0x1c2   : > { %670 = dma.done.wait (%p535_p5), %s402_s5, 128  }
 0x1c3   : > { %672 = vsyncadd (%p535_p5), %s402_s5, 4294967168  ;;  %s411_s6 = scalar_lea.sflag [#allocation5], %s401_s29 }
 0x1c4   : > { %674 = dma.done.wait (%p535_p5), %s411_s6, 32  }
 0x1c5   : > { %676 = vsyncadd (%p535_p5), %s411_s6, 4294967264  ;;  %s21_s20 = sadd.s32 1, %s699_s20   ;;  %s871_s15 = smov %s683_s16 }
 0x1c6   : > { %p18_p6 = scmp.ge.s32.totalorder %s21_s20, 4   ;;  %s872_s16 = smov %s687_s17 }
 0x1c7   : > { %s873_s17 = smov %s784_s28  ;;  %s874_s18 = smov %s695_s19 }
 0x1c8   : > { %s875_s19 = smov %s877_s23  ;;  %20 = sbr.rel (!%p18_p6) target bundleno = 6 (0x6), region = 84 }
 0x1cd   :  { %416 = vsyncpa [#allocation3], 1 }
 0x1ce   :  { %418 = vsyncpa [#allocation3 + $0x1], 1 }
 0x1cf   :  { %419 = vsyncpa [#allocation5], 1 }
 0x1d0   :  { %421 = vsyncpa [#allocation5 + $0x1], 1 }

</bundles_post_ra>
